<compile_context>
chip_gen: v7x
topology: tpu7x:2x2x1
jax: 0.10.0
libtpu: 0.0.40
codegen_flags: <defaults>
</compile_context>

<pallas_src>
import functools

import jax
import jax.numpy as jnp
from jax import lax
from jax.experimental import pallas as pl
from jax.experimental.pallas import tpu as pltpu


def _round_up(x, m):
    return (x + m - 1) // m * m


def _ce_kernel(logits_ref, targets_ref, loss_rows_ref,
               m_scr, l_scr, t_scr, *, num_classes, batch_size, block_c):
    # logits_ref:    (TB, TC) float  (VMEM tile of the padded logits)
    # targets_ref:   (TB, 1)  int32  (same block for every class tile)
    # loss_rows_ref: (TB, 1)  f32    (per-row loss, written on the last class tile)
    # m_scr/l_scr/t_scr: (TB, 1) f32 running max / exp-sum / target-logit scratch
    i = pl.program_id(0)          # batch tile (parallel)
    k = pl.program_id(1)          # class tile (reduction, last)
    nk = pl.num_programs(1)

    x = logits_ref[...].astype(jnp.float32)              # upcast in-register
    tb = x.shape[0]

    @pl.when(k == 0)
    def _():
        m_scr[...] = jnp.full_like(m_scr, -jnp.inf)
        l_scr[...] = jnp.zeros_like(l_scr)
        t_scr[...] = jnp.zeros_like(t_scr)

    # Global class ids of this tile; padded classes (>= num_classes) are masked
    # out of the logsumexp and can never equal a target label.
    class_ids = k * block_c + lax.broadcasted_iota(jnp.int32, x.shape, 1)
    valid_c = class_ids < num_classes
    x_masked = jnp.where(valid_c, x, -jnp.inf)

    # Online log-sum-exp update over class tiles.
    m_old = m_scr[...]
    m_new = jnp.maximum(m_old, jnp.max(x_masked, axis=1, keepdims=True))
    p = jnp.where(valid_c, jnp.exp(x - m_new), 0.0)
    l_scr[...] = l_scr[...] * jnp.exp(m_old - m_new) + jnp.sum(p, axis=1, keepdims=True)
    m_scr[...] = m_new

    # Masked "gather" of the target logit (it lands in exactly one class tile).
    t = targets_ref[...]                                  # (TB, 1) int32
    t_scr[...] += jnp.sum(jnp.where(class_ids == t, x, 0.0), axis=1, keepdims=True)

    @pl.when(k == nk - 1)
    def _():
        row_ids = i * tb + lax.broadcasted_iota(jnp.int32, (tb, 1), 0)
        row_valid = row_ids < batch_size                  # mask padded batch rows
        per_row = m_scr[...] + jnp.log(l_scr[...]) - t_scr[...]   # lse - x[target]
        loss_rows_ref[...] = jnp.where(row_valid, per_row, 0.0)


def cross_entropy(logits, targets, *, block_b=256, block_c=2048):
    """logits: (B, C) float (f32/bf16); targets: (B,) int labels. Scalar f32 loss."""
    B, C = logits.shape

    tb = min(_round_up(B, 8), block_b)        # sublane multiple of 8
    tc = min(_round_up(C, 128), block_c)      # lane-dense class tiles
    Bp, Cp = _round_up(B, tb), _round_up(C, tc)

    if (Bp, Cp) != (B, C):                    # zero-pad; masked inside the kernel
        logits = jnp.pad(logits, ((0, Bp - B), (0, Cp - C)))
    targets2d = targets.astype(jnp.int32).reshape(B, 1)
    if Bp != B:
        targets2d = jnp.pad(targets2d, ((0, Bp - B), (0, 0)))

    nb, nc = Bp // tb, Cp // tc

    kernel = functools.partial(
        _ce_kernel, num_classes=C, batch_size=B, block_c=tc)

    per_row = pl.pallas_call(
        kernel,
        out_shape=jax.ShapeDtypeStruct((Bp, 1), jnp.float32),
        grid_spec=pltpu.PrefetchScalarGridSpec(
            num_scalar_prefetch=0,
            grid=(nb, nc),
            in_specs=[
                pl.BlockSpec((tb, tc), lambda i, k: (i, k)),
                pl.BlockSpec((tb, 1), lambda i, k: (i, 0)),
            ],
            out_specs=pl.BlockSpec((tb, 1), lambda i, k: (i, 0)),
            scratch_shapes=[pltpu.VMEM((tb, 1), jnp.float32)] * 3,
        ),
        compiler_params=pltpu.CompilerParams(
            dimension_semantics=("parallel", "arbitrary")),
    )(logits, targets2d)

    return jnp.sum(per_row) / jnp.float32(B)


def cross_entropy_ref(logits, targets):
    """Pure-JAX reference for verification."""
    log_probs = jax.nn.log_softmax(logits.astype(jnp.float32), axis=1)
    onehot = jax.nn.one_hot(targets, logits.shape[1], dtype=jnp.float32)
    return jnp.sum(jnp.mean(-onehot * log_probs, axis=0))


if __name__ == "__main__":
    key = jax.random.PRNGKey(0)
    k1, k2, k3, k4 = jax.random.split(key, 4)

    # Small f32 case (batch=8, classes=32); class axis gets padded 32 -> 128.
    B, C = 8, 32
    logits = jax.random.normal(k1, (B, C), dtype=jnp.float32)
    targets = jax.random.randint(k2, (B,), 0, C, dtype=jnp.int32)
    loss = cross_entropy(logits, targets)
    jax.block_until_ready(loss)
    ref = cross_entropy_ref(logits, targets)
    assert jnp.allclose(loss, ref, atol=1e-5, rtol=1e-5), (loss, ref)

    # Non-aligned shapes (exercise batch + class padding paths).
    B2, C2 = 10, 200
    logits2 = jax.random.normal(k3, (B2, C2), dtype=jnp.float32)
    targets2 = jax.random.randint(k4, (B2,), 0, C2, dtype=jnp.int32)
    loss2 = cross_entropy(logits2, targets2)
    jax.block_until_ready(loss2)
    ref2 = cross_entropy_ref(logits2, targets2)
    assert jnp.allclose(loss2, ref2, atol=1e-5, rtol=1e-5), (loss2, ref2)

    # bf16 passthrough (halves HBM traffic; accumulation stays f32 in-kernel).
    logits_bf16 = logits.astype(jnp.bfloat16)
    loss_bf16 = cross_entropy(logits_bf16, targets)
    jax.block_until_ready(loss_bf16)
    ref_bf16 = cross_entropy_ref(logits_bf16, targets)
    assert jnp.allclose(loss_bf16, ref_bf16, atol=3e-2, rtol=3e-2), (loss_bf16, ref_bf16)

    print("KERNEL_OK")
</pallas_src>

<mosaic_0001>
module attributes {stable_mosaic.version = 11 : i64} {
  func.func @_ce_kernel(%arg0: i32, %arg1: i32, %arg2: memref<8x128xf32, #tpu.memory_space<vmem>>, %arg3: memref<8x1xi32, #tpu.memory_space<vmem>>, %arg4: memref<8x1xf32, #tpu.memory_space<vmem>>, %arg5: memref<8x1xf32, #tpu.memory_space<vmem>>, %arg6: memref<8x1xf32, #tpu.memory_space<vmem>>, %arg7: memref<8x1xf32, #tpu.memory_space<vmem>>) attributes {dimension_semantics = [#tpu.dimension_semantics<parallel>, #tpu.dimension_semantics<arbitrary>], iteration_bounds = array<i64: 1, 1>, scalar_prefetch = 0 : i64, scratch_operands = 3 : i64, tpu.core_type = #tpu.core_type<tc>, window_params = [{transform_indices = @transform_0, window_bounds = array<i64: 8, 128>}, {transform_indices = @transform_1, window_bounds = array<i64: 8, 1>}, {transform_indices = @transform_2, window_bounds = array<i64: 8, 1>}]} {
    %c0 = arith.constant 0 : index
    %c0_0 = arith.constant 0 : index
    %0 = vector.load %arg2[%c0, %c0_0] : memref<8x128xf32, #tpu.memory_space<vmem>>, vector<8x128xf32>
    %c0_i32 = arith.constant 0 : i32
    %1 = arith.cmpi eq, %arg1, %c0_i32 : i32
    %2 = arith.extui %1 : i1 to i32
    %c0_i32_1 = arith.constant 0 : i32
    %3 = arith.cmpi ne, %2, %c0_i32_1 : i32
    scf.if %3 {
      %cst_23 = arith.constant 0xFF800000 : f32
      %43 = vector.broadcast %cst_23 : f32 to vector<8x1xf32>
      %c0_24 = arith.constant 0 : index
      %c0_25 = arith.constant 0 : index
      %44 = vector.load %arg5[%c0_24, %c0_25] : memref<8x1xf32, #tpu.memory_space<vmem>>, vector<8x1xf32>
      tpu.vector_store %arg5[%c0_24, %c0_25], %43 {strides = array<i32>} : memref<8x1xf32, #tpu.memory_space<vmem>>, vector<8x1xf32>,
      %cst_26 = arith.constant 0.000000e+00 : f32
      %45 = vector.broadcast %cst_26 : f32 to vector<8x1xf32>
      %c0_27 = arith.constant 0 : index
      %c0_28 = arith.constant 0 : index
      %46 = vector.load %arg6[%c0_27, %c0_28] : memref<8x1xf32, #tpu.memory_space<vmem>>, vector<8x1xf32>
      tpu.vector_store %arg6[%c0_27, %c0_28], %45 {strides = array<i32>} : memref<8x1xf32, #tpu.memory_space<vmem>>, vector<8x1xf32>,
      %cst_29 = arith.constant 0.000000e+00 : f32
      %47 = vector.broadcast %cst_29 : f32 to vector<8x1xf32>
      %c0_30 = arith.constant 0 : index
      %c0_31 = arith.constant 0 : index
      %48 = vector.load %arg7[%c0_30, %c0_31] : memref<8x1xf32, #tpu.memory_space<vmem>>, vector<8x1xf32>
      tpu.vector_store %arg7[%c0_30, %c0_31], %47 {strides = array<i32>} : memref<8x1xf32, #tpu.memory_space<vmem>>, vector<8x1xf32>,
    } else {
    }
    %c128_i32 = arith.constant 128 : i32
    %4 = arith.muli %arg1, %c128_i32 : i32
    %5 = tpu.iota {dimensions = array<i32: 1>} : vector<8x128xi32>
    %6 = vector.broadcast %4 : i32 to vector<8x128xi32>
    %7 = arith.addi %6, %5 : vector<8x128xi32>
    %c32_i32 = arith.constant 32 : i32
    %8 = vector.broadcast %c32_i32 : i32 to vector<8x128xi32>
    %9 = arith.cmpi slt, %7, %8 : vector<8x128xi32>
    %cst = arith.constant 0xFF800000 : f32
    %10 = vector.broadcast %cst : f32 to vector<8x128xf32>
    %11 = arith.select %9, %0, %10 : vector<8x128xi1>, vector<8x128xf32>
    %c0_2 = arith.constant 0 : index
    %c0_3 = arith.constant 0 : index
    %12 = vector.load %arg5[%c0_2, %c0_3] : memref<8x1xf32, #tpu.memory_space<vmem>>, vector<8x1xf32>
    %cst_4 = arith.constant dense<0xFF800000> : vector<8xf32>
    %13 = vector.multi_reduction <maximumf>, %11, %cst_4 [1] : vector<8x128xf32> to vector<8xf32>
    %14 = vector.shape_cast %13 : vector<8xf32> to vector<8x1xf32>
    %15 = arith.maximumf %12, %14 : vector<8x1xf32>
    %16 = vector.broadcast %15 : vector<8x1xf32> to vector<8x128xf32>
    %17 = arith.subf %0, %16 : vector<8x128xf32>
    %18 = math.exp %17 : vector<8x128xf32>
    %cst_5 = arith.constant 0.000000e+00 : f32
    %19 = vector.broadcast %cst_5 : f32 to vector<8x128xf32>
    %20 = arith.select %9, %18, %19 : vector<8x128xi1>, vector<8x128xf32>
    %c0_6 = arith.constant 0 : index
    %c0_7 = arith.constant 0 : index
    %21 = vector.load %arg6[%c0_6, %c0_7] : memref<8x1xf32, #tpu.memory_space<vmem>>, vector<8x1xf32>
    %22 = arith.subf %12, %15 : vector<8x1xf32>
    %23 = math.exp %22 : vector<8x1xf32>
    %24 = arith.mulf %21, %23 : vector<8x1xf32>
    %cst_8 = arith.constant dense<0.000000e+00> : vector<8xf32>
    %25 = vector.multi_reduction <add>, %20, %cst_8 [1] : vector<8x128xf32> to vector<8xf32>
    %26 = vector.shape_cast %25 : vector<8xf32> to vector<8x1xf32>
    %27 = arith.addf %24, %26 : vector<8x1xf32>
    %c0_9 = arith.constant 0 : index
    %c0_10 = arith.constant 0 : index
    %28 = vector.load %arg6[%c0_9, %c0_10] : memref<8x1xf32, #tpu.memory_space<vmem>>, vector<8x1xf32>
    tpu.vector_store %arg6[%c0_9, %c0_10], %27 {strides = array<i32>} : memref<8x1xf32, #tpu.memory_space<vmem>>, vector<8x1xf32>,
    %c0_11 = arith.constant 0 : index
    %c0_12 = arith.constant 0 : index
    %29 = vector.load %arg5[%c0_11, %c0_12] : memref<8x1xf32, #tpu.memory_space<vmem>>, vector<8x1xf32>
    tpu.vector_store %arg5[%c0_11, %c0_12], %15 {strides = array<i32>} : memref<8x1xf32, #tpu.memory_space<vmem>>, vector<8x1xf32>,
    %c0_13 = arith.constant 0 : index
    %c0_14 = arith.constant 0 : index
    %30 = vector.load %arg3[%c0_13, %c0_14] : memref<8x1xi32, #tpu.memory_space<vmem>>, vector<8x1xi32>
    %c0_15 = arith.constant 0 : index
    %c0_16 = arith.constant 0 : index
    %31 = vector.load %arg7[%c0_15, %c0_16] : memref<8x1xf32, #tpu.memory_space<vmem>>, vector<8x1xf32>
    %32 = vector.broadcast %30 : vector<8x1xi32> to vector<8x128xi32>
    %33 = arith.cmpi eq, %7, %32 : vector<8x128xi32>
    %cst_17 = arith.constant 0.000000e+00 : f32
    %34 = vector.broadcast %cst_17 : f32 to vector<8x128xf32>
    %35 = arith.select %33, %0, %34 : vector<8x128xi1>, vector<8x128xf32>
    %cst_18 = arith.constant dense<0.000000e+00> : vector<8xf32>
    %36 = vector.multi_reduction <add>, %35, %cst_18 [1] : vector<8x128xf32> to vector<8xf32>
    %37 = vector.shape_cast %36 : vector<8xf32> to vector<8x1xf32>
    %38 = arith.addf %31, %37 : vector<8x1xf32>
    %c0_19 = arith.constant 0 : index
    %c0_20 = arith.constant 0 : index
    %39 = vector.load %arg7[%c0_19, %c0_20] : memref<8x1xf32, #tpu.memory_space<vmem>>, vector<8x1xf32>
    tpu.vector_store %arg7[%c0_19, %c0_20], %38 {strides = array<i32>} : memref<8x1xf32, #tpu.memory_space<vmem>>, vector<8x1xf32>,
    %c0_i32_21 = arith.constant 0 : i32
    %40 = arith.cmpi eq, %arg1, %c0_i32_21 : i32
    %41 = arith.extui %40 : i1 to i32
    %c0_i32_22 = arith.constant 0 : i32
    %42 = arith.cmpi ne, %41, %c0_i32_22 : i32
    scf.if %42 {
      %c8_i32 = arith.constant 8 : i32
      %43 = arith.muli %arg0, %c8_i32 : i32
      %44 = tpu.iota {dimensions = array<i32: 0>} : vector<8x1xi32>
      %45 = vector.broadcast %43 : i32 to vector<8x1xi32>
      %46 = arith.addi %45, %44 : vector<8x1xi32>
      %c8_i32_23 = arith.constant 8 : i32
      %47 = vector.broadcast %c8_i32_23 : i32 to vector<8x1xi32>
      %48 = arith.cmpi slt, %46, %47 : vector<8x1xi32>
      %c0_24 = arith.constant 0 : index
      %c0_25 = arith.constant 0 : index
      %49 = vector.load %arg5[%c0_24, %c0_25] : memref<8x1xf32, #tpu.memory_space<vmem>>, vector<8x1xf32>
      %c0_26 = arith.constant 0 : index
      %c0_27 = arith.constant 0 : index
      %50 = vector.load %arg6[%c0_26, %c0_27] : memref<8x1xf32, #tpu.memory_space<vmem>>, vector<8x1xf32>
      %51 = math.log %50 : vector<8x1xf32>
      %52 = arith.addf %49, %51 : vector<8x1xf32>
      %c0_28 = arith.constant 0 : index
      %c0_29 = arith.constant 0 : index
      %53 = vector.load %arg7[%c0_28, %c0_29] : memref<8x1xf32, #tpu.memory_space<vmem>>, vector<8x1xf32>
      %54 = arith.subf %52, %53 : vector<8x1xf32>
      %cst_30 = arith.constant 0.000000e+00 : f32
      %55 = vector.broadcast %cst_30 : f32 to vector<8x1xf32>
      %56 = arith.select %48, %54, %55 : vector<8x1xi1>, vector<8x1xf32>
      %c0_31 = arith.constant 0 : index
      %c0_32 = arith.constant 0 : index
      %57 = vector.load %arg4[%c0_31, %c0_32] : memref<8x1xf32, #tpu.memory_space<vmem>>, vector<8x1xf32>
      tpu.vector_store %arg4[%c0_31, %c0_32], %56 {strides = array<i32>} : memref<8x1xf32, #tpu.memory_space<vmem>>, vector<8x1xf32>,
    } else {
    }
    return
  }
  func.func @transform_0(%arg0: i32, %arg1: i32) -> (i32, i32) {
    %c0_i32 = arith.constant 0 : i32
    return %arg0, %arg1 : i32, i32
  }
  func.func @transform_1(%arg0: i32, %arg1: i32) -> (i32, i32) {
    %c0_i32 = arith.constant 0 : i32
    %c0_i32_0 = arith.constant 0 : i32
    return %arg0, %c0_i32 : i32, i32
  }
  func.func @transform_2(%arg0: i32, %arg1: i32) -> (i32, i32) {
    %c0_i32 = arith.constant 0 : i32
    %c0_i32_0 = arith.constant 0 : i32
    return %arg0, %c0_i32 : i32, i32
  }
}

</mosaic_0001>

<bundles_post_ra>
// kernel: tpu_custom_call.1
= control target key start
LH: loop header
LB: loop body
LE: loop exit
PB: predicated region body
PF: predicated region fallthrough
CT: control target
= control target key end

     0   :  { %v21_v0 = vlaneseq  ;;  %vm16_vm0 = vcmask 7168   ;;  %v95_v1 = vmov -inf   ;;  %v96_v5 = vmov 0   ;;  %s131_s0 = inlined_call_operand.vmem [shape: f32[8,128], index: 0, kind: input, shape index: {}]   ;;  %s132_s1 = inlined_call_operand.vmem [shape: s32[8,1], index: 1, kind: input, shape index: {}]   ;;  %s133_s2 = inlined_call_operand.vmem [shape: f32[8,1], index: 2, kind: output, shape index: {}]  }
   0x1   :  { %17 = vst.msk [vmem:[#allocation2] sm:$0xff] %vm16_vm0, %v95_v1  ;;  %v11_v2 = vld [vmem:[%s131_s0] sm:$0xff]  ;;  %87 = vset.pattern.permute.xlu0 %v96_v5  ;;  %88 = vset.pattern.permute.xlu1 %v96_v5  ;;  %v97_v6 = vmov 0.0  }
   0x2   :  { %v22_v3 = vand.u32 127, %v21_v0  ;;  %18 = vst.msk [vmem:[#allocation3] sm:$0xff] %vm16_vm0, %v97_v6  ;;  %19 = vst.msk [vmem:[#allocation4] sm:$0xff] %vm16_vm0, %v97_v6  ;;  %v51_v7 = vld [vmem:[%s132_s1] sm:$0xff] }
   0x3   :  { %54 = vperm.xlu1 %88, %v51_v7  }
   0x4   :  { %vm25_vm1 = vcmp.lt.s32.totalorder %v22_v3, 32 }
   0x5   :  { %v26_v4 = vsel %vm25_vm1, %v11_v2, -inf }
   0x6   :  { %28 = vmax.xlane.f32.xlu0 %v26_v4 }
   0x8   :  { %v27_v8 = vld [vmem:[#allocation2] sm:$0xff] }
   0x9   :  { %v40_v21 = vld [vmem:[#allocation3] sm:$0xff]  ;;  %v52_v25 = vld [vmem:[#allocation4] sm:$0xff] }
  0x82   :  { %v55_v15 = vpop.permute.xlu1 %54 }
  0x83   :  { %vm56_vm2 = vcmp.eq.s32.totalorder %v22_v3, %v55_v15 }
  0x84   :  { %v57_v18 = vsel %vm56_vm2, %v11_v2, 0.0 }
  0x93   :  { %v29_v9 = vpop.xlane.xlu0 %28 }
  0x94   :  { %v30_v10 = vmax.f32 %v27_v8, %v29_v9 }
  0x96   :  { %v41_v11 = vsub.f32 %v27_v8, %v30_v10  ;;  %50 = vst.msk [vmem:[#allocation2] sm:$0xff] %vm16_vm0, %v30_v10  ;;  %33 = vperm.xlu0 %87, %v30_v10  }
  0x98   :  { %v42_v19 = vmul.f32 1.442695, %v41_v11 }
  0x9d   :  { %v71_v31 = vld [vmem:[#allocation2] sm:$0xff] }
 0x115   :  { %v34_v12 = vpop.permute.xlu0 %33 }
 0x116   :  { %v36_v13 = vsub.f32 %v11_v2, %v34_v12 }
 0x118   :  { %v37_v14 = vmul.f32 1.442695, %v36_v13 }
 0x11a   :  { %89 = vpow2.f32 %v37_v14 }
 0x11b   :  { %91 = vpow2.f32 %v42_v19 }
 0x124   :  { %v90_v16 = vpop.eup %89 }
 0x125   :  { %v39_v17 = vsel %vm25_vm1, %v90_v16, 0.0  ;;  %v92_v20 = vpop.eup %91 }
 0x126   :  { %45 = vadd.xlane.f32.xlu1 %v39_v17  ;;  %v44_v22 = vmul.f32 %v92_v20, %v40_v21 }
 0x12a   :  { %58 = vadd.xlane.f32.xlu1 %v57_v18 }
 0x1b3   :  { %v46_v23 = vpop.xlane.xlu1 %45 }
 0x1b4   :  { %v47_v24 = vadd.f32 %v46_v23, %v44_v22 }
 0x1b6   :  { %49 = vst.msk [vmem:[#allocation3] sm:$0xff] %vm16_vm0, %v47_v24 }
 0x1b7   :  { %v59_v26 = vpop.xlane.xlu1 %58 }
 0x1b8   :  { %v60_v27 = vadd.f32 %v59_v26, %v52_v25 }
 0x1ba   :  { %61 = vst.msk [vmem:[#allocation4] sm:$0xff] %vm16_vm0, %v60_v27 }
 0x1bd   :  { %v72_v28 = vld [vmem:[#allocation3] sm:$0xff] }
 0x1be   :  { %93 = vlog2.f32 %v72_v28 }
 0x1c1   :  { %v76_v32 = vld [vmem:[#allocation4] sm:$0xff] }
 0x1c8   :  { %v94_v29 = vpop.eup %93 }
 0x1c9   :  { %v74_v30 = vmul.f32 0.6931472, %v94_v29 }
 0x1cb   :  { %v75_v33 = vadd.f32 %v74_v30, %v71_v31 }
 0x1cd   :  { %v77_v34 = vsub.f32 %v75_v33, %v76_v32 }
 0x1cf   :  { %79 = vst.msk [vmem:[%s133_s2] sm:$0xff] %vm16_vm0, %v77_v34 }

</bundles_post_ra>
